<compile_context>
chip_gen: v7x
topology: tpu7x:2x2x1
jax: 0.10.0
libtpu: 0.0.40
codegen_flags: <defaults>
</compile_context>

<pallas_src>
import functools

import jax
import jax.numpy as jnp
from jax.experimental import pallas as pl
from jax.experimental.pallas import tpu as pltpu

D_IN = 28 * 28   # 784
H1 = 128
H2 = 64
D_OUT = 10


def _round_up(x, m):
    return (x + m - 1) // m * m


def _mlp_kernel(x_ref, w1_ref, b1_ref, w2_ref, b2_ref, w3_ref, b3_ref, o_ref):
    # x tile: (TB, 784) f32 streamed from HBM; cast to bf16 for the MXU.
    x = x_ref[...].astype(jnp.bfloat16)

    # fc1 + ReLU  (f32 accumulation on the MXU)
    h1 = jnp.dot(x, w1_ref[...], preferred_element_type=jnp.float32)       # (TB, 128)
    h1 = jnp.maximum(h1 + b1_ref[...], 0.0).astype(jnp.bfloat16)

    # fc2 + ReLU
    h2 = jnp.dot(h1, w2_ref[...], preferred_element_type=jnp.float32)      # (TB, 64)
    h2 = jnp.maximum(h2 + b2_ref[...], 0.0).astype(jnp.bfloat16)

    # fc3 (narrow N=10 output; masked store, but 12.8x less HBM writeback)
    out = jnp.dot(h2, w3_ref[...], preferred_element_type=jnp.float32)     # (TB, 10)
    o_ref[...] = (out + b3_ref[...]).astype(o_ref.dtype)


def prepare_params(params):
    """One-time parameter prep: bf16 weights (MXU input dtype), f32 biases.

    params: (w1, b1, w2, b2, w3, b3) with weights shaped (in, out), biases (1, out).
    Call once and reuse the result across forward calls.
    """
    w1, b1, w2, b2, w3, b3 = params
    return (
        w1.astype(jnp.bfloat16), b1.astype(jnp.float32),
        w2.astype(jnp.bfloat16), b2.astype(jnp.float32),
        w3.astype(jnp.bfloat16), b3.astype(jnp.float32),
    )


@functools.partial(jax.jit, static_argnames=("block_b",))
def simple_nn_forward(x, prepared_params, *, block_b=2048):
    """x: (B, 1, 28, 28) float32 (NCHW, like the PyTorch module). Returns (B, 10) f32.

    prepared_params: output of prepare_params().
    block_b: max batch tile. At 2048 the f32 x tile is ~6.1 MiB (x2 buffers)
    plus <0.5 MiB of weights/output -> ~13 MiB VMEM, safe on v5e/v6e/v7x.
    """
    w1, b1, w2, b2, w3, b3 = prepared_params
    B = x.shape[0]
    x_flat = x.reshape(B, D_IN)                      # torch.flatten(x, 1)

    # Batch tiling: aim for >= 2 grid steps when B allows (v7x megacore),
    # tb a multiple of 16, B padded up to a tile multiple (padded rows sliced off).
    b_aligned = _round_up(B, 16)
    tb = min(block_b, max(16, _round_up(pl.cdiv(b_aligned, 2), 16)))
    b_pad = _round_up(B, tb)
    grid = (b_pad // tb,)

    if b_pad != B:
        x_flat = jnp.pad(x_flat, ((0, b_pad - B), (0, 0)))

    # Weights/biases: full-array blocks with constant index_map -> fetched once,
    # VMEM-resident across all grid steps. Only x / out are streamed.
    def const(arr):
        nd = arr.ndim
        return pl.BlockSpec(arr.shape, lambda i, _nd=nd: (0,) * _nd)

    out = pl.pallas_call(
        _mlp_kernel,
        out_shape=jax.ShapeDtypeStruct((b_pad, D_OUT), jnp.float32),
        grid=grid,
        in_specs=[
            pl.BlockSpec((tb, D_IN), lambda i: (i, 0)),   # x: streamed f32 batch tiles
            const(w1), const(b1),
            const(w2), const(b2),
            const(w3), const(b3),
        ],
        out_specs=pl.BlockSpec((tb, D_OUT), lambda i: (i, 0)),
        compiler_params=pltpu.CompilerParams(
            dimension_semantics=("parallel",),            # shard steps over v7x's 2 TCs
            vmem_limit_bytes=32 * 1024 * 1024,            # headroom for tb=2048 tiles
        ),
    )(x_flat, w1, b1, w2, b2, w3, b3)

    if b_pad != B:
        out = out[:B]
    return out


def init_params(key):
    """Deterministic init matching the PyTorch layer shapes.
    Weights stored as (in_features, out_features); biases as (1, out_features)."""
    k1, k2, k3, k4, k5, k6 = jax.random.split(key, 6)

    def lin(kw, kb, fan_in, fan_out):
        bound = 1.0 / jnp.sqrt(fan_in)   # torch.nn.Linear default bound 1/sqrt(fan_in)
        w = jax.random.uniform(kw, (fan_in, fan_out), jnp.float32, -bound, bound)
        b = jax.random.uniform(kb, (1, fan_out), jnp.float32, -bound, bound)
        return w, b

    w1, b1 = lin(k1, k2, D_IN, H1)
    w2, b2 = lin(k3, k4, H1, H2)
    w3, b3 = lin(k5, k6, H2, D_OUT)
    return (w1, b1, w2, b2, w3, b3)


def _reference_bf16(x, params):
    """Plain-JAX reference with the same bf16-input / f32-accumulate math."""
    w1, b1, w2, b2, w3, b3 = params
    xb = x.reshape(x.shape[0], -1).astype(jnp.bfloat16)
    h = jnp.dot(xb, w1.astype(jnp.bfloat16), preferred_element_type=jnp.float32) + b1
    h = jnp.maximum(h, 0.0).astype(jnp.bfloat16)
    h = jnp.dot(h, w2.astype(jnp.bfloat16), preferred_element_type=jnp.float32) + b2
    h = jnp.maximum(h, 0.0).astype(jnp.bfloat16)
    return jnp.dot(h, w3.astype(jnp.bfloat16), preferred_element_type=jnp.float32) + b3


if __name__ == "__main__":
    key = jax.random.PRNGKey(0)
    kp, kx1, kx2 = jax.random.split(key, 3)
    raw_params = init_params(kp)
    prepared = prepare_params(raw_params)

    # Small batch: single grid step, exercises batch padding (4 -> 16 rows).
    x_small = jax.random.normal(kx1, (4, 1, 28, 28), jnp.float32)
    out_small = jax.block_until_ready(simple_nn_forward(x_small, prepared, block_b=16))
    assert out_small.shape == (4, 10)
    ref_small = _reference_bf16(x_small, raw_params)
    assert jnp.allclose(out_small, ref_small, atol=1e-2, rtol=1e-2)

    # Multi-step grid: 3 steps of 16 rows, exercises the streamed-x pipeline
    # and the "parallel" batch axis with >= 2 steps.
    x_big = jax.random.normal(kx2, (48, 1, 28, 28), jnp.float32)
    out_big = jax.block_until_ready(simple_nn_forward(x_big, prepared, block_b=16))
    assert out_big.shape == (48, 10)
    ref_big = _reference_bf16(x_big, raw_params)
    assert jnp.allclose(out_big, ref_big, atol=1e-2, rtol=1e-2)

    print("KERNEL_OK")
</pallas_src>

<mosaic_0001>
module attributes {stable_mosaic.version = 11 : i64} {
  func.func @_mlp_kernel(%arg0: i32, %arg1: memref<16x784xf32, #tpu.memory_space<vmem>>, %arg2: memref<784x128xbf16, #tpu.memory_space<vmem>>, %arg3: memref<1x128xf32, #tpu.memory_space<vmem>>, %arg4: memref<128x64xbf16, #tpu.memory_space<vmem>>, %arg5: memref<1x64xf32, #tpu.memory_space<vmem>>, %arg6: memref<64x10xbf16, #tpu.memory_space<vmem>>, %arg7: memref<1x10xf32, #tpu.memory_space<vmem>>, %arg8: memref<16x10xf32, #tpu.memory_space<vmem>>) attributes {dimension_semantics = [#tpu.dimension_semantics<parallel>], iteration_bounds = array<i64: 1>, scalar_prefetch = 0 : i64, scratch_operands = 0 : i64, tpu.core_type = #tpu.core_type<tc>, window_params = [{transform_indices = @transform_0, window_bounds = array<i64: 16, 784>}, {pipeline_mode = #tpu.pipeline_mode<synchronous>, transform_indices = @transform_1, window_bounds = array<i64: 784, 128>}, {pipeline_mode = #tpu.pipeline_mode<synchronous>, transform_indices = @transform_2, window_bounds = array<i64: 1, 128>}, {pipeline_mode = #tpu.pipeline_mode<synchronous>, transform_indices = @transform_3, window_bounds = array<i64: 128, 64>}, {pipeline_mode = #tpu.pipeline_mode<synchronous>, transform_indices = @transform_4, window_bounds = array<i64: 1, 64>}, {pipeline_mode = #tpu.pipeline_mode<synchronous>, transform_indices = @transform_5, window_bounds = array<i64: 64, 10>}, {pipeline_mode = #tpu.pipeline_mode<synchronous>, transform_indices = @transform_6, window_bounds = array<i64: 1, 10>}, {transform_indices = @transform_7, window_bounds = array<i64: 16, 10>}]} {
    %c0 = arith.constant 0 : index
    %c0_0 = arith.constant 0 : index
    %0 = vector.load %arg1[%c0, %c0_0] : memref<16x784xf32, #tpu.memory_space<vmem>>, vector<16x784xf32>
    %1 = arith.truncf %0 : vector<16x784xf32> to vector<16x784xbf16>
    %c0_1 = arith.constant 0 : index
    %c0_2 = arith.constant 0 : index
    %2 = vector.load %arg2[%c0_1, %c0_2] : memref<784x128xbf16, #tpu.memory_space<vmem>>, vector<784x128xbf16>
    %cst = arith.constant dense<0.000000e+00> : vector<16x128xf32>
    %3 = tpu.matmul %1, %2, %cst {dimension_numbers = #tpu.dot_dimension_numbers<[1], [0], [0], [1], [0, 0, 1, 1], [], []>} : vector<16x784xbf16>, vector<784x128xbf16>, vector<16x128xf32> -> vector<16x128xf32>
    %c0_3 = arith.constant 0 : index
    %c0_4 = arith.constant 0 : index
    %4 = vector.load %arg3[%c0_3, %c0_4] : memref<1x128xf32, #tpu.memory_space<vmem>>, vector<1x128xf32>
    %5 = vector.broadcast %4 : vector<1x128xf32> to vector<16x128xf32>
    %6 = arith.addf %3, %5 : vector<16x128xf32>
    %cst_5 = arith.constant 0.000000e+00 : f32
    %7 = vector.broadcast %cst_5 : f32 to vector<16x128xf32>
    %8 = arith.maximumf %6, %7 : vector<16x128xf32>
    %9 = arith.truncf %8 : vector<16x128xf32> to vector<16x128xbf16>
    %c0_6 = arith.constant 0 : index
    %c0_7 = arith.constant 0 : index
    %10 = vector.load %arg4[%c0_6, %c0_7] : memref<128x64xbf16, #tpu.memory_space<vmem>>, vector<128x64xbf16>
    %cst_8 = arith.constant dense<0.000000e+00> : vector<16x64xf32>
    %11 = tpu.matmul %9, %10, %cst_8 {dimension_numbers = #tpu.dot_dimension_numbers<[1], [0], [0], [1], [0, 0, 1, 1], [], []>} : vector<16x128xbf16>, vector<128x64xbf16>, vector<16x64xf32> -> vector<16x64xf32>
    %c0_9 = arith.constant 0 : index
    %c0_10 = arith.constant 0 : index
    %12 = vector.load %arg5[%c0_9, %c0_10] : memref<1x64xf32, #tpu.memory_space<vmem>>, vector<1x64xf32>
    %13 = vector.broadcast %12 : vector<1x64xf32> to vector<16x64xf32>
    %14 = arith.addf %11, %13 : vector<16x64xf32>
    %cst_11 = arith.constant 0.000000e+00 : f32
    %15 = vector.broadcast %cst_11 : f32 to vector<16x64xf32>
    %16 = arith.maximumf %14, %15 : vector<16x64xf32>
    %17 = arith.truncf %16 : vector<16x64xf32> to vector<16x64xbf16>
    %c0_12 = arith.constant 0 : index
    %c0_13 = arith.constant 0 : index
    %18 = vector.load %arg6[%c0_12, %c0_13] : memref<64x10xbf16, #tpu.memory_space<vmem>>, vector<64x10xbf16>
    %cst_14 = arith.constant dense<0.000000e+00> : vector<16x10xf32>
    %19 = tpu.matmul %17, %18, %cst_14 {dimension_numbers = #tpu.dot_dimension_numbers<[1], [0], [0], [1], [0, 0, 1, 1], [], []>} : vector<16x64xbf16>, vector<64x10xbf16>, vector<16x10xf32> -> vector<16x10xf32>
    %c0_15 = arith.constant 0 : index
    %c0_16 = arith.constant 0 : index
    %20 = vector.load %arg7[%c0_15, %c0_16] : memref<1x10xf32, #tpu.memory_space<vmem>>, vector<1x10xf32>
    %21 = vector.broadcast %20 : vector<1x10xf32> to vector<16x10xf32>
    %22 = arith.addf %19, %21 : vector<16x10xf32>
    %c0_17 = arith.constant 0 : index
    %c0_18 = arith.constant 0 : index
    %23 = vector.load %arg8[%c0_17, %c0_18] : memref<16x10xf32, #tpu.memory_space<vmem>>, vector<16x10xf32>
    tpu.vector_store %arg8[%c0_17, %c0_18], %22 {strides = array<i32>} : memref<16x10xf32, #tpu.memory_space<vmem>>, vector<16x10xf32>,
    return
  }
  func.func @transform_0(%arg0: i32) -> (i32, i32) {
    %c0_i32 = arith.constant 0 : i32
    %c0_i32_0 = arith.constant 0 : i32
    return %arg0, %c0_i32 : i32, i32
  }
  func.func @transform_1(%arg0: i32) -> (i32, i32) {
    %c0_i32 = arith.constant 0 : i32
    %c0_i32_0 = arith.constant 0 : i32
    %c0_i32_1 = arith.constant 0 : i32
    return %c0_i32, %c0_i32_0 : i32, i32
  }
  func.func @transform_2(%arg0: i32) -> (i32, i32) {
    %c0_i32 = arith.constant 0 : i32
    %c0_i32_0 = arith.constant 0 : i32
    %c0_i32_1 = arith.constant 0 : i32
    return %c0_i32, %c0_i32_0 : i32, i32
  }
  func.func @transform_3(%arg0: i32) -> (i32, i32) {
    %c0_i32 = arith.constant 0 : i32
    %c0_i32_0 = arith.constant 0 : i32
    %c0_i32_1 = arith.constant 0 : i32
    return %c0_i32, %c0_i32_0 : i32, i32
  }
  func.func @transform_4(%arg0: i32) -> (i32, i32) {
    %c0_i32 = arith.constant 0 : i32
    %c0_i32_0 = arith.constant 0 : i32
    %c0_i32_1 = arith.constant 0 : i32
    return %c0_i32, %c0_i32_0 : i32, i32
  }
  func.func @transform_5(%arg0: i32) -> (i32, i32) {
    %c0_i32 = arith.constant 0 : i32
    %c0_i32_0 = arith.constant 0 : i32
    %c0_i32_1 = arith.constant 0 : i32
    return %c0_i32, %c0_i32_0 : i32, i32
  }
  func.func @transform_6(%arg0: i32) -> (i32, i32) {
    %c0_i32 = arith.constant 0 : i32
    %c0_i32_0 = arith.constant 0 : i32
    %c0_i32_1 = arith.constant 0 : i32
    return %c0_i32, %c0_i32_0 : i32, i32
  }
  func.func @transform_7(%arg0: i32) -> (i32, i32) {
    %c0_i32 = arith.constant 0 : i32
    %c0_i32_0 = arith.constant 0 : i32
    return %arg0, %c0_i32 : i32, i32
  }
}

</mosaic_0001>

<bundles_post_ra>
// kernel: simple_nn_forward.1
= control target key start
LH: loop header
LB: loop body
LE: loop exit
PB: predicated region body
PF: predicated region fallthrough
CT: control target
= control target key end

     0   :  { %v1073_v43 = vmov 0.0   ;;  %vm1074_vm0 = vmmov 0   ;;  %vm447_vm1 = vcmask 130048   ;;  %vm772_vm2 = vcmask 523264   ;;  %s1374_s1 = inlined_call_operand.vmem [shape: bf16[784,128], index: 1, kind: input, shape index: {}]   ;;  %s1375_s0 = inlined_call_operand.vmem [shape: f32[16,784], index: 0, kind: input, shape index: {}]   ;;  %s1376_s3 = inlined_call_operand.vmem [shape: bf16[128,64], index: 3, kind: input, shape index: {}]   ;;  %s1377_s5 = inlined_call_operand.vmem [shape: bf16[64,10], index: 5, kind: input, shape index: {}]   ;;  %s1378_s2 = inlined_call_operand.vmem [shape: f32[1,128], index: 2, kind: input, shape index: {}]   ;;  %s1379_s4 = inlined_call_operand.vmem [shape: f32[1,64], index: 4, kind: input, shape index: {}]   ;;  %s1380_s6 = inlined_call_operand.vmem [shape: f32[1,10], index: 6, kind: input, shape index: {}]   ;;  %s1381_s7 = inlined_call_operand.vmem [shape: f32[16,10], index: 7, kind: output, shape index: {}]  }
   0x1   :  { %v1012_v0 = vld [vmem:[%s1374_s1 + $0x40] sm:$0xff]   ;;  %v1016_v4 = vld [vmem:[%s1374_s1 + $0x48] sm:$0xff]   ;;  %v1020_v8 = vld [vmem:[%s1374_s1 + $0x50] sm:$0xff]   ;;  %vm817_vm3 = vcmask 80896  }
   0x2   :  { %v1013_v1 = vld [vmem:[%s1374_s1] sm:$0xff]   ;;  %890 = vmatprep.subr.bf16.mxu0 %v1012_v0  ;;  %v1017_v5 = vld [vmem:[%s1374_s1 + $0x8] sm:$0xff]   ;;  %v1021_v9 = vld [vmem:[%s1374_s1 + $0x10] sm:$0xff]  }
   0x3   :  { %v1014_v2 = vld [vmem:[%s1374_s1 + $0xc0] sm:$0xff]   ;;  %891 = vmatpush3.bf16.msra.mxu0 %v1013_v1  ;;  %v1018_v6 = vld [vmem:[%s1374_s1 + $0xc8] sm:$0xff]   ;;  %v1022_v10 = vld [vmem:[%s1374_s1 + $0xd0] sm:$0xff]  }
   0x4   :  { %v1015_v3 = vld [vmem:[%s1374_s1 + $0x80] sm:$0xff]   ;;  %912 = vmatprep.subr.bf16.mxu1 %v1014_v2  ;;  %892 = vmatprep.subr.bf16.mxu0 %v1016_v4  ;;  %v1019_v7 = vld [vmem:[%s1374_s1 + $0x88] sm:$0xff]   ;;  %v1023_v11 = vld [vmem:[%s1374_s1 + $0x90] sm:$0xff]  }
   0x5   :  { %913 = vmatpush3.bf16.msra.mxu1 %v1015_v3  ;;  %v1024_v12 = vld [vmem:[%s1374_s1 + $0x58] sm:$0xff]   ;;  %v1028_v16 = vld [vmem:[%s1374_s1 + $0x60] sm:$0xff]   ;;  %v1032_v20 = vld [vmem:[%s1374_s1 + $0x68] sm:$0xff]  }
   0x6   :  { %914 = vmatprep.subr.bf16.mxu1 %v1018_v6  ;;  %v1025_v13 = vld [vmem:[%s1374_s1 + $0x18] sm:$0xff]   ;;  %v1029_v17 = vld [vmem:[%s1374_s1 + $0x20] sm:$0xff]   ;;  %v1033_v21 = vld [vmem:[%s1374_s1 + $0x28] sm:$0xff]  }
   0x7   :  { %893 = vmatpush3.bf16.msra.mxu0 %v1017_v5  ;;  %v1026_v14 = vld [vmem:[%s1374_s1 + $0xd8] sm:$0xff]   ;;  %v1030_v18 = vld [vmem:[%s1374_s1 + $0xe0] sm:$0xff]   ;;  %v1034_v22 = vld [vmem:[%s1374_s1 + $0xe8] sm:$0xff]  }
   0x8   :  { %894 = vmatprep.subr.bf16.mxu0 %v1020_v8  ;;  %v1027_v15 = vld [vmem:[%s1374_s1 + $0x98] sm:$0xff]   ;;  %v1031_v19 = vld [vmem:[%s1374_s1 + $0xa0] sm:$0xff]   ;;  %v1035_v23 = vld [vmem:[%s1374_s1 + $0xa8] sm:$0xff]  }
   0x9   :  { %915 = vmatpush3.bf16.msra.mxu1 %v1019_v7  ;;  %v1036_v24 = vld [vmem:[%s1374_s1 + $0x70] sm:$0xff]   ;;  %v1040_v28 = vld [vmem:[%s1374_s1 + $0x78] sm:$0xff]   ;;  %v28_v31 = vld [vmem:[%s1375_s0 + $0x8] sm:$0xff] }
   0xa   :  { %916 = vmatprep.subr.bf16.mxu1 %v1022_v10  ;;  %v1037_v25 = vld [vmem:[%s1374_s1 + $0x30] sm:$0xff]   ;;  %v1041_v29 = vld [vmem:[%s1374_s1 + $0x38] sm:$0xff]   ;;  %v35_v32 = vld [vmem:[%s1375_s0 + $0x40] sm:$0xff] }
   0xb   :  { %895 = vmatpush3.bf16.msra.mxu0 %v1021_v9  ;;  %v1038_v26 = vld [vmem:[%s1374_s1 + $0xf0] sm:$0xff]   ;;  %v1042_v30 = vld [vmem:[%s1374_s1 + $0xf8] sm:$0xff]   ;;  %v42_v33 = vpack.c.bf16 %v35_v32, %v28_v31  ;;  %v27_v35 = vld [vmem:[%s1375_s0] sm:$0xff] }
   0xc   :  { %896 = vmatprep.subr.bf16.mxu0 %v1024_v12  ;;  %v1039_v27 = vld [vmem:[%s1374_s1 + $0xb0] sm:$0xff]   ;;  %v1043_v34 = vld [vmem:[%s1374_s1 + $0xb8] sm:$0xff]   ;;  %v1044_v38 = vld [vmem:[%s1374_s1 + $0x140] sm:$0xff]  }
   0xd   :  { %917 = vmatpush3.bf16.msra.mxu1 %v1023_v11  ;;  %v34_v36 = vld [vmem:[%s1375_s0 + $0x38] sm:$0xff]  ;;  %483 = vmatprep.mubr.bf16.mxu0 %v42_v33  ;;  %v37_v40 = vld [vmem:[%s1375_s0 + $0x50] sm:$0xff]  ;;  %v1045_v42 = vld [vmem:[%s1374_s1 + $0x100] sm:$0xff]  }
   0xe   :  { %918 = vmatprep.subr.bf16.mxu1 %v1026_v14  ;;  %v41_v37 = vpack.c.bf16 %v34_v36, %v27_v35  ;;  %v30_v39 = vld [vmem:[%s1375_s0 + $0x18] sm:$0xff]  ;;  %v29_v44 = vld [vmem:[%s1375_s0 + $0x10] sm:$0xff]  ;;  %v36_v45 = vld [vmem:[%s1375_s0 + $0x48] sm:$0xff] }
   0xf   :  { %897 = vmatpush3.bf16.msra.mxu0 %v1025_v13  ;;  %v44_v41 = vpack.c.bf16 %v37_v40, %v30_v39  ;;  %v43_v46 = vpack.c.bf16 %v36_v45, %v29_v44  ;;  %v1046_v47 = vld [vmem:[%s1374_s1 + $0x148] sm:$0xff]   ;;  %v1048_v49 = vld [vmem:[%s1374_s1 + $0x150] sm:$0xff]   ;;  %v1050_v51 = vld [vmem:[%s1374_s1 + $0x158] sm:$0xff]  }
  0x10   :  { %898 = vmatprep.subr.bf16.mxu0 %v1028_v16  ;;  %v1047_v48 = vld [vmem:[%s1374_s1 + $0x108] sm:$0xff]   ;;  %v1049_v50 = vld [vmem:[%s1374_s1 + $0x110] sm:$0xff]   ;;  %v1051_v52 = vld [vmem:[%s1374_s1 + $0x118] sm:$0xff]  }
  0x11   :  { %919 = vmatpush3.bf16.msra.mxu1 %v1027_v15  ;;  %524 = vmatprep.mubr.bf16.mxu1 %v44_v41  ;;  %v1052_v53 = vld [vmem:[%s1374_s1 + $0x160] sm:$0xff]   ;;  %v1054_v55 = vld [vmem:[%s1374_s1 + $0x168] sm:$0xff]   ;;  %v33_v61 = vld [vmem:[%s1375_s0 + $0x30] sm:$0xff] }
  0x12   :  { %920 = vmatprep.subr.bf16.mxu1 %v1030_v18  ;;  %v1053_v54 = vld [vmem:[%s1374_s1 + $0x120] sm:$0xff]   ;;  %v32_v57 = vld [vmem:[%s1375_s0 + $0x28] sm:$0xff]  ;;  %v1056_v63 = vld [vmem:[%s1374_s1 + $0x170] sm:$0xff]  }
  0x13   :  { %899 = vmatpush3.bf16.msra.mxu0 %v1029_v17  ;;  %v1060_v56 = vld [vmem:[%s1374_s1 + $0x180] sm:$0xff]   ;;  %v1055_v59 = vld [vmem:[%s1374_s1 + $0x128] sm:$0xff]   ;;  %v1057_v1 = vld [vmem:[%s1374_s1 + $0x130] sm:$0xff]  }
  0x14   :  { %900 = vmatprep.subr.bf16.mxu0 %v1032_v20  ;;  %v39_v58 = vld [vmem:[%s1375_s0 + $0x60] sm:$0xff]  ;;  %v40_v62 = vld [vmem:[%s1375_s0 + $0x68] sm:$0xff]  ;;  %v1058_v2 = vld [vmem:[%s1374_s1 + $0x178] sm:$0xff]  }
  0x15   :  { %921 = vmatpush3.bf16.msra.mxu1 %v1031_v19  ;;  %v46_v60 = vpack.c.bf16 %v39_v58, %v32_v57  ;;  %v47_v0 = vpack.c.bf16 %v40_v62, %v33_v61  ;;  %v1059_v3 = vld [vmem:[%s1374_s1 + $0x138] sm:$0xff]   ;;  %v31_v4 = vld [vmem:[%s1375_s0 + $0x20] sm:$0xff]  ;;  %v1062_v8 = vld [vmem:[%s1376_s3 + $0x8] sm:$0xff]  }
  0x16   :  { %922 = vmatprep.subr.bf16.mxu1 %v1034_v22  ;;  %v38_v5 = vld [vmem:[%s1375_s0 + $0x58] sm:$0xff]  ;;  %v1061_v7 = vld [vmem:[%s1376_s3] sm:$0xff]   ;;  %v1063_v9 = vld [vmem:[%s1376_s3 + $0x10] sm:$0xff]  }
  0x17   :  { %901 = vmatpush3.bf16.msra.mxu0 %v1033_v21  ;;  %v45_v6 = vpack.c.bf16 %v38_v5, %v31_v4  ;;  %v1064_v10 = vld [vmem:[%s1376_s3 + $0x18] sm:$0xff]   ;;  %v1065_v11 = vld [vmem:[%s1376_s3 + $0x20] sm:$0xff]   ;;  %v1066_v12 = vld [vmem:[%s1376_s3 + $0x28] sm:$0xff]  }
  0x18   :  { %902 = vmatprep.subr.bf16.mxu0 %v1036_v24  ;;  %v1067_v13 = vld [vmem:[%s1376_s3 + $0x30] sm:$0xff]   ;;  %v1068_v14 = vld [vmem:[%s1376_s3 + $0x38] sm:$0xff]   ;;  %v1069_v15 = vld [vmem:[%s1377_s5] sm:$0xff]  }
  0x19   :  { %923 = vmatpush3.bf16.msra.mxu1 %v1035_v23  ;;  %v1070_v16 = vld [vmem:[%s1377_s5 + $0x8] sm:$0xff]   ;;  %v824_v18 = vld [vmem:[%s1378_s2] ss:$0 sm:$0xff] }
  0x1a   :  { %924 = vmatprep.subr.bf16.mxu1 %v1038_v26 }
  0x1b   :  { %903 = vmatpush3.bf16.msra.mxu0 %v1037_v25 }
  0x1c   :  { %904 = vmatprep.subr.bf16.mxu0 %v1040_v28 }
  0x1d   :  { %925 = vmatpush3.bf16.msra.mxu1 %v1039_v27 }
  0x1e   :  { %926 = vmatprep.subr.bf16.mxu1 %v1042_v30 }
  0x1f   :  { %905 = vmatpush3.bf16.msra.mxu0 %v1041_v29 }
  0x20   :  { %934 = vmatprep.subr.bf16.mxu0 %v1044_v38 }
  0x21   :  { %927 = vmatpush3.bf16.msra.mxu1 %v1043_v34 }
  0x22   :  { %972 = vmatprep.subr.bf16.mxu1 %v1073_v43  ;;  %484 = vmatmul.mubr.bf16.vlgmr.msra.gmra.mrb[0].mxu0 %v41_v37 }
  0x23   :  { %935 = vmatpush3.bf16.msra.mxu0 %v1045_v42  ;;  %565 = vmatprep.mubr.bf16.mxu0 %v46_v60 }
  0x24   :  { %525 = vmatmul.mubr.bf16.vlgmr.msra.gmra.mrb[0].mxu1 %v43_v46  ;;  %936 = vmatprep.subr.bf16.mxu0 %v1046_v47 }
  0x25   :  { %974 = vmatprep.mubr.msk.bf16.mxu1 %vm1074_vm0, %v1073_v43  ;;  %973 = vmatpush3.bf16.msra.mxu1 %v1060_v56 }
  0x26   :  { %978 = vmatprep.subr.bf16.mxu1 %v1073_v43 }
  0x27   :  { %937 = vmatpush3.bf16.msra.mxu0 %v1047_v48 }
  0x28   :  { %938 = vmatprep.subr.bf16.mxu0 %v1048_v49 }
  0x2b   :  { %939 = vmatpush3.bf16.msra.mxu0 %v1049_v50 }
  0x2c   :  { %940 = vmatprep.subr.bf16.mxu0 %v1050_v51  ;;  %975 = vmatmul.mubr.msk.bf16.vlgmr.msra.gmra.mrb[4].mxu1 %vm447_vm1, %v47_v0 }
  0x2d   :  { %994 = vmatprep.mubr.msk.bf16.mxu1 %vm1074_vm0, %v1073_v43  ;;  %979 = vmatpush3.bf16.msra.mxu1 %v1061_v7 }
  0x2e   :  { %980 = vmatprep.subr.bf16.mxu1 %v1073_v43 }
  0x2f   :  { %941 = vmatpush3.bf16.msra.mxu0 %v1051_v52  ;;  %v1071_v52 = vld [vmem:[%s1377_s5 + $0x10] sm:$0xff]  }
  0x30   :  { %942 = vmatprep.subr.bf16.mxu0 %v1052_v53  ;;  %v1072_v53 = vld [vmem:[%s1377_s5 + $0x18] sm:$0xff]  }
  0x31   :  { %981 = vmatpush3.bf16.msra.mxu1 %v1062_v8 }
  0x32   :  { %982 = vmatprep.subr.bf16.mxu1 %v1073_v43 }
  0x33   :  { %943 = vmatpush3.bf16.msra.mxu0 %v1053_v54  ;;  %v875_v54 = vld [vmem:[%s1379_s4] ss:$0 sm:$0xff] }
  0x34   :  { %944 = vmatprep.subr.bf16.mxu0 %v1054_v55 }
  0x35   :  { %983 = vmatpush3.bf16.msra.mxu1 %v1063_v9 }
  0x36   :  { %984 = vmatprep.subr.bf16.mxu1 %v1073_v43 }
  0x37   :  { %945 = vmatpush3.bf16.msra.mxu0 %v1055_v59 }
  0x38   :  { %946 = vmatprep.subr.bf16.mxu0 %v1056_v63 }
  0x39   :  { %985 = vmatpush3.bf16.msra.mxu1 %v1064_v10 }
  0x3a   :  { %986 = vmatprep.subr.bf16.mxu1 %v1073_v43 }
  0x3b   :  { %947 = vmatpush3.bf16.msra.mxu0 %v1057_v1 }
  0x3c   :  { %948 = vmatprep.subr.bf16.mxu0 %v1058_v2 }
  0x3d   :  { %987 = vmatpush3.bf16.msra.mxu1 %v1065_v11 }
  0x3e   :  { %988 = vmatprep.subr.bf16.mxu1 %v1073_v43 }
  0x3f   :  { %949 = vmatpush3.bf16.msra.mxu0 %v1059_v3 }
  0x40   :  { %998 = vmatprep.subr.bf16.mxu0 %v1073_v43 }
  0x41   :  { %989 = vmatpush3.bf16.msra.mxu1 %v1066_v12 }
  0x42   :  { %566 = vmatmul.mubr.bf16.vlgmr.msra.gmra.mrb[4].mxu0 %v45_v6  ;;  %990 = vmatprep.subr.bf16.mxu1 %v1073_v43 }
  0x43   :  { %1006 = vmatprep.mubr.msk.bf16.mxu0 %vm1074_vm0, %v1073_v43  ;;  %999 = vmatpush3.bf16.msra.mxu0 %v1069_v15 }
  0x44   :  { %1000 = vmatprep.subr.bf16.mxu0 %v1073_v43 }
  0x45   :  { %991 = vmatpush3.bf16.msra.mxu1 %v1067_v13 }
  0x46   :  { %992 = vmatprep.subr.bf16.mxu1 %v1073_v43 }
  0x47   :  { %1001 = vmatpush3.bf16.msra.mxu0 %v1070_v16 }
  0x48   :  { %1002 = vmatprep.subr.bf16.mxu0 %v1073_v43 }
  0x49   :  { %993 = vmatpush3.bf16.msra.mxu1 %v1068_v14 }
  0x4b   :  { %1003 = vmatpush3.bf16.msra.mxu0 %v1071_v52 }
  0x4c   :  { %1004 = vmatprep.subr.bf16.mxu0 %v1073_v43  ;;  %v884_v43 = vld [vmem:[%s1380_s6] ss:$0 sm:$0xff] }
  0x4f   :  { %1005 = vmatpush3.bf16.msra.mxu0 %v1072_v53 }
  0xf5   :  { %v906_v17 = vpop.f32.mrb[0].mxu0 }
  0xf6   :  { %v907_v19 = vpop.f32.mrb[1].mxu0 }
  0xf7   :  { %v908_v20 = vadd.f32 %v907_v19, %v906_v17  ;;  %v909_v21 = vpop.f32.mrb[2].mxu0  ;;  %v928_v22 = vpop.f32.mrb[0].mxu1 }
  0xf8   :  { %v910_v23 = vpop.f32.mrb[3].mxu0  ;;  %v929_v26 = vpop.f32.mrb[1].mxu1 }
  0xf9   :  { %v486_v24 = vadd.f32 %v908_v20, %v824_v18  ;;  %v911_v25 = vadd.f32 %v910_v23, %v909_v21  ;;  %v930_v27 = vadd.f32 %v929_v26, %v928_v22  ;;  %v931_v28 = vpop.f32.mrb[2].mxu1 }
  0xfa   :  { %v932_v30 = vpop.f32.mrb[3].mxu1 }
  0xfb   :  { %v489_v29 = vadd.f32 %v911_v25, %v824_v18  ;;  %v527_v31 = vadd.f32 %v930_v27, %v486_v24  ;;  %v933_v32 = vadd.f32 %v932_v30, %v931_v28 }
  0xfd   :  { %v530_v33 = vadd.f32 %v933_v32, %v489_v29 }
  0xff   :  { %v608_v34 = vpop.f32.mrb[4].mxu1 }
 0x100   :  { %v976_v35 = vpop.f32.mrb[5].mxu1 }
 0x101   :  { %v611_v36 = vpop.f32.mrb[6].mxu1 }
 0x102   :  { %v977_v37 = vpop.f32.mrb[7].mxu1 }
 0x115   :  { %v950_v38 = vpop.f32.mrb[4].mxu0 }
 0x116   :  { %v951_v39 = vpop.f32.mrb[5].mxu0 }
 0x117   :  { %v952_v40 = vadd.f32 %v951_v39, %v950_v38  ;;  %v953_v41 = vpop.f32.mrb[6].mxu0 }
 0x118   :  { %v954_v42 = vpop.f32.mrb[7].mxu0 }
 0x119   :  { %v568_v44 = vadd.f32 %v952_v40, %v527_v31  ;;  %v955_v45 = vadd.f32 %v954_v42, %v953_v41 }
 0x11b   :  { %v609_v46 = vadd.f32 %v608_v34, %v568_v44  ;;  %v571_v47 = vadd.f32 %v955_v45, %v530_v33 }
 0x11d   :  { %v612_v48 = vadd.f32 %v611_v36, %v571_v47  ;;  %v615_v49 = vmax.f32 %v609_v46, 0.0 }
 0x11f   :  { %v616_v50 = vmax.f32 %v612_v48, 0.0 }
 0x121   :  { %v617_v51 = vpack.c.bf16 %v616_v50, %v615_v49 }
 0x123   :  { %995 = vmatmul.mubr.bf16.vlgmr.msra.gmra.mrb[8].mxu1 %v617_v51 }
 0x1f6   :  { %v723_v55 = vpop.f32.mrb[8].mxu1 }
 0x1f7   :  { %v724_v56 = vadd.f32 %v875_v54, %v723_v55  ;;  %v996_v57 = vpop.f32.mrb[9].mxu1 }
 0x1f8   :  { %v726_v58 = vpop.f32.mrb[10].mxu1 }
 0x1f9   :  { %v727_v59 = vadd.f32 %v875_v54, %v726_v58  ;;  %v997_v60 = vpop.f32.mrb[11].mxu1  ;;  %v730_v61 = vmax.f32 %v724_v56, 0.0 }
 0x1fb   :  { %v731_v62 = vmax.f32 %v727_v59, 0.0 }
 0x1fd   :  { %v732_v63 = vpack.c.bf16 %v731_v62, %v730_v61 }
 0x1ff   :  { %1007 = vmatmul.mubr.msk.bf16.vlgmr.msra.gmra.mrb[8].mxu0 %vm772_vm2, %v732_v63 }
 0x2d2   :  { %v810_v0 = vpop.f32.mrb[8].mxu0 }
 0x2d3   :  { %v811_v1 = vadd.f32 %v884_v43, %v810_v0  ;;  %v1008_v2 = vpop.f32.mrb[9].mxu0 }
 0x2d4   :  { %v813_v3 = vpop.f32.mrb[10].mxu0 }
 0x2d5   :  { %818 = vst.msk [vmem:[%s1381_s7] sm:$0xff] %vm817_vm3, %v811_v1  ;;  %v814_v4 = vadd.f32 %v884_v43, %v813_v3  ;;  %v1009_v5 = vpop.f32.mrb[11].mxu0 }
 0x2d7   :  { %819 = vst.msk [vmem:[%s1381_s7 + $0x8] sm:$0xff] %vm817_vm3, %v814_v4 }

</bundles_post_ra>
